<compile_context>
chip_gen: v5e
topology: v5e:2x2
jax: 0.10.0
libtpu: 0.0.40
codegen_flags: <defaults>
</compile_context>

<pallas_src>
import jax
import jax.numpy as jnp
from jax.experimental import pallas as pl
from jax.experimental.pallas import tpu as pltpu


def _round_up(x, m):
    return (x + m - 1) // m * m


# Conservative scoped-VMEM budget (v5e default is 16 MiB; leave headroom).
_VMEM_BUDGET = 12 * 1024 * 1024


def _vmem_bytes(tm, C, act_bytes, w_bytes):
    """Rough double-buffered VMEM footprint of one grid step."""
    return (2 * 2 * tm * C * act_bytes     # z_src + z_dst tiles, 2 buffers each
            + 2 * 2 * C * C * w_bytes      # W_src + W_dst tiles, 2 buffers each
            + 2 * 2 * C * 4                # folded bias row + w_final row
            + 2 * tm * 4)                  # output row, 2 buffers


def _link_predictor_kernel(zs_ref, zd_ref, ws_ref, wd_ref, bh_ref, wf_ref,
                           bf_ref, o_ref):
    # Two K=C matmuls on the MXU, f32 accumulation, folded hidden bias.
    h = (jnp.dot(zs_ref[...], ws_ref[...], preferred_element_type=jnp.float32)
         + jnp.dot(zd_ref[...], wd_ref[...], preferred_element_type=jnp.float32)
         + bh_ref[...])
    h = jnp.maximum(h, 0.0)                     # ReLU (VPU)
    # Final Linear(C, 1): elementwise multiply + lane reduction, plus the
    # final bias read from SMEM.  Produces a lane-dense row so the store is a
    # full-lane vst (not tm masked single-lane stores).
    row = jnp.sum(h * wf_ref[...], axis=-1) + bf_ref[0]     # (tm,)
    o_ref[...] = row[None, None, :].astype(o_ref.dtype)      # (1, 1, tm)


def link_predictor(z_src, z_dst, params, *, tm=1024):
    """Forward pass of the TGN LinkPredictor.

    params: w_src (C,C), b_src (C,), w_dst (C,C), b_dst (C,), w_final (C,1),
    b_final (1,).  Hidden weights are stored pre-transposed as (in, out) so the
    kernel computes plain `x @ W`.  z_src/z_dst and w_src/w_dst may be float32
    or bfloat16; accumulation and the output are float32.
    """
    N, C = z_src.shape
    assert z_dst.shape == (N, C)

    act_bytes = max(z_src.dtype.itemsize, z_dst.dtype.itemsize)
    w_bytes = max(params["w_src"].dtype.itemsize, params["w_dst"].dtype.itemsize)

    # Row tile: as large as possible (amortizes ~0.35us/grid-step overhead),
    # multiple of 128 (aligned loads, lane-dense output), clamped to the
    # problem size and to the VMEM budget.
    tm = max(128, _round_up(min(tm, N), 128))
    while tm > 128 and _vmem_bytes(tm, C, act_bytes, w_bytes) > _VMEM_BUDGET:
        tm -= 128

    padded_N = _round_up(N, tm)
    if padded_N != N:
        pad = padded_N - N
        z_src = jnp.pad(z_src, ((0, pad), (0, 0)))
        z_dst = jnp.pad(z_dst, ((0, pad), (0, 0)))
    grid_m = padded_N // tm

    # Fold the two hidden biases into one (1, C) tile (one broadcast add per
    # grid step, one fewer per-step DMA).
    bh = (params["b_src"].astype(jnp.float32)
          + params["b_dst"].astype(jnp.float32)).reshape(1, C)
    # Final projection weights as a (1, C) row for the VPU-mul + lane-reduce.
    wf = params["w_final"].astype(jnp.float32).reshape(1, C)
    # Final bias as an SMEM scalar (added inside the kernel).
    bf = params["b_final"].astype(jnp.float32).reshape(1)

    cp_kwargs = dict(dimension_semantics=("parallel",))
    est = _vmem_bytes(tm, C, act_bytes, w_bytes)
    if est > _VMEM_BUDGET:
        # Only for very large C: request more scoped VMEM explicitly.
        cp_kwargs["vmem_limit_bytes"] = int(est * 3 // 2)

    out_rows = pl.pallas_call(
        _link_predictor_kernel,
        out_shape=jax.ShapeDtypeStruct((grid_m, 1, tm), jnp.float32),
        grid_spec=pltpu.PrefetchScalarGridSpec(
            num_scalar_prefetch=0,
            grid=(grid_m,),
            in_specs=[
                pl.BlockSpec((tm, C), lambda i: (i, 0)),    # z_src tile
                pl.BlockSpec((tm, C), lambda i: (i, 0)),    # z_dst tile
                pl.BlockSpec((C, C), lambda i: (0, 0)),     # W_src (in,out)
                pl.BlockSpec((C, C), lambda i: (0, 0)),     # W_dst (in,out)
                pl.BlockSpec((1, C), lambda i: (0, 0)),     # b_src + b_dst
                pl.BlockSpec((1, C), lambda i: (0, 0)),     # w_final row
                pl.BlockSpec(memory_space=pltpu.MemorySpace.SMEM),  # b_final
            ],
            out_specs=pl.BlockSpec((1, 1, tm), lambda i: (i, 0, 0)),
        ),
        compiler_params=pltpu.CompilerParams(**cp_kwargs),
    )(z_src, z_dst, params["w_src"], params["w_dst"], bh, wf, bf)

    # Un-pad and return in the (N, 1) layout of the PyTorch module.
    return out_rows.reshape(-1)[:N].reshape(N, 1)


def init_params(key, in_channels):
    """Deterministic init mirroring torch.nn.Linear's U(-1/sqrt(fan_in), +)."""
    ks = jax.random.split(key, 6)
    bound = 1.0 / jnp.sqrt(jnp.float32(in_channels))

    def lin(kw, kb, out_c):
        # PyTorch stores W as (out, in); we keep the transposed (in, out) form.
        w = jax.random.uniform(kw, (in_channels, out_c), jnp.float32,
                               -bound, bound)
        b = jax.random.uniform(kb, (out_c,), jnp.float32, -bound, bound)
        return w, b

    w_src, b_src = lin(ks[0], ks[1], in_channels)
    w_dst, b_dst = lin(ks[2], ks[3], in_channels)
    w_fin, b_fin = lin(ks[4], ks[5], 1)
    return dict(w_src=w_src, b_src=b_src,
                w_dst=w_dst, b_dst=b_dst,
                w_final=w_fin, b_final=b_fin)


def reference(z_src, z_dst, p):
    h = (z_src.astype(jnp.float32) @ p["w_src"].astype(jnp.float32) + p["b_src"]
         + z_dst.astype(jnp.float32) @ p["w_dst"].astype(jnp.float32) + p["b_dst"])
    h = jnp.maximum(h, 0.0)
    return h @ p["w_final"] + p["b_final"]


if __name__ == "__main__":
    key = jax.random.PRNGKey(0)
    k1, k2, k3, k4, k5 = jax.random.split(key, 5)

    # --- 1) small f32 case (matches the module's toy usage) ---------------
    N, C = 16, 32
    z_src = jax.random.normal(k1, (N, C), jnp.float32)
    z_dst = jax.random.normal(k2, (N, C), jnp.float32)
    params = init_params(k3, C)

    out = jax.block_until_ready(link_predictor(z_src, z_dst, params))
    ref = reference(z_src, z_dst, params)
    assert out.shape == (N, 1)
    assert jnp.allclose(out, ref, atol=1e-5, rtol=1e-5), "f32 mismatch"

    # --- 2) bf16 activations + hidden weights (halves HBM traffic) --------
    p_bf = dict(params)
    p_bf["w_src"] = params["w_src"].astype(jnp.bfloat16)
    p_bf["w_dst"] = params["w_dst"].astype(jnp.bfloat16)
    out_bf = jax.block_until_ready(
        link_predictor(z_src.astype(jnp.bfloat16),
                       z_dst.astype(jnp.bfloat16), p_bf))
    assert out_bf.shape == (N, 1)
    assert jnp.allclose(out_bf, ref, atol=0.1, rtol=0.1), "bf16 mismatch"

    # --- 3) multi-tile grid + padding path (N not a tile multiple) --------
    N2 = 300
    z_src2 = jax.random.normal(k4, (N2, C), jnp.float32)
    z_dst2 = jax.random.normal(k5, (N2, C), jnp.float32)
    out2 = jax.block_until_ready(link_predictor(z_src2, z_dst2, params, tm=128))
    ref2 = reference(z_src2, z_dst2, params)
    assert out2.shape == (N2, 1)
    assert jnp.allclose(out2, ref2, atol=1e-5, rtol=1e-5), "multi-tile mismatch"

    print("KERNEL_OK")
</pallas_src>

<mosaic_0001>
module attributes {stable_mosaic.version = 11 : i64} {
  func.func @_link_predictor_kernel(%arg0: i32, %arg1: memref<128x32xf32, #tpu.memory_space<vmem>>, %arg2: memref<128x32xf32, #tpu.memory_space<vmem>>, %arg3: memref<32x32xf32, #tpu.memory_space<vmem>>, %arg4: memref<32x32xf32, #tpu.memory_space<vmem>>, %arg5: memref<1x32xf32, #tpu.memory_space<vmem>>, %arg6: memref<1x32xf32, #tpu.memory_space<vmem>>, %arg7: memref<1xf32, #tpu.memory_space<smem>>, %arg8: memref<1x1x128xf32, #tpu.memory_space<vmem>>) attributes {dimension_semantics = [#tpu.dimension_semantics<parallel>], iteration_bounds = array<i64: 1>, scalar_prefetch = 0 : i64, scratch_operands = 0 : i64, tpu.core_type = #tpu.core_type<tc>, window_params = [{transform_indices = @transform_0, window_bounds = array<i64: 128, 32>}, {transform_indices = @transform_1, window_bounds = array<i64: 128, 32>}, {pipeline_mode = #tpu.pipeline_mode<synchronous>, transform_indices = @transform_2, window_bounds = array<i64: 32, 32>}, {pipeline_mode = #tpu.pipeline_mode<synchronous>, transform_indices = @transform_3, window_bounds = array<i64: 32, 32>}, {pipeline_mode = #tpu.pipeline_mode<synchronous>, transform_indices = @transform_4, window_bounds = array<i64: 1, 32>}, {pipeline_mode = #tpu.pipeline_mode<synchronous>, transform_indices = @transform_5, window_bounds = array<i64: 1, 32>}, {transform_indices = @transform_6, window_bounds = array<i64: 1>}, {transform_indices = @transform_7, window_bounds = array<i64: 1, 1, 128>}]} {
    %c0 = arith.constant 0 : index
    %c0_0 = arith.constant 0 : index
    %0 = vector.load %arg1[%c0, %c0_0] : memref<128x32xf32, #tpu.memory_space<vmem>>, vector<128x32xf32>
    %c0_1 = arith.constant 0 : index
    %c0_2 = arith.constant 0 : index
    %1 = vector.load %arg3[%c0_1, %c0_2] : memref<32x32xf32, #tpu.memory_space<vmem>>, vector<32x32xf32>
    %cst = arith.constant dense<0.000000e+00> : vector<128x32xf32>
    %2 = tpu.matmul %0, %1, %cst {dimension_numbers = #tpu.dot_dimension_numbers<[1], [0], [0], [1], [0, 0, 1, 1], [], []>} : vector<128x32xf32>, vector<32x32xf32>, vector<128x32xf32> -> vector<128x32xf32>
    %c0_3 = arith.constant 0 : index
    %c0_4 = arith.constant 0 : index
    %3 = vector.load %arg2[%c0_3, %c0_4] : memref<128x32xf32, #tpu.memory_space<vmem>>, vector<128x32xf32>
    %c0_5 = arith.constant 0 : index
    %c0_6 = arith.constant 0 : index
    %4 = vector.load %arg4[%c0_5, %c0_6] : memref<32x32xf32, #tpu.memory_space<vmem>>, vector<32x32xf32>
    %cst_7 = arith.constant dense<0.000000e+00> : vector<128x32xf32>
    %5 = tpu.matmul %3, %4, %cst_7 {dimension_numbers = #tpu.dot_dimension_numbers<[1], [0], [0], [1], [0, 0, 1, 1], [], []>} : vector<128x32xf32>, vector<32x32xf32>, vector<128x32xf32> -> vector<128x32xf32>
    %6 = arith.addf %2, %5 : vector<128x32xf32>
    %c0_8 = arith.constant 0 : index
    %c0_9 = arith.constant 0 : index
    %7 = vector.load %arg5[%c0_8, %c0_9] : memref<1x32xf32, #tpu.memory_space<vmem>>, vector<1x32xf32>
    %8 = vector.broadcast %7 : vector<1x32xf32> to vector<128x32xf32>
    %9 = arith.addf %6, %8 : vector<128x32xf32>
    %cst_10 = arith.constant 0.000000e+00 : f32
    %10 = vector.broadcast %cst_10 : f32 to vector<128x32xf32>
    %11 = arith.maximumf %9, %10 : vector<128x32xf32>
    %c0_11 = arith.constant 0 : index
    %c0_12 = arith.constant 0 : index
    %12 = vector.load %arg6[%c0_11, %c0_12] : memref<1x32xf32, #tpu.memory_space<vmem>>, vector<1x32xf32>
    %13 = vector.broadcast %12 : vector<1x32xf32> to vector<128x32xf32>
    %14 = arith.mulf %11, %13 : vector<128x32xf32>
    %cst_13 = arith.constant dense<0.000000e+00> : vector<128xf32>
    %15 = vector.multi_reduction <add>, %14, %cst_13 [1] : vector<128x32xf32> to vector<128xf32>
    %c0_14 = arith.constant 0 : index
    %16 = memref.load %arg7[%c0_14] : memref<1xf32, #tpu.memory_space<smem>>
    %17 = vector.broadcast %16 : f32 to vector<128xf32>
    %18 = arith.addf %15, %17 : vector<128xf32>
    %19 = vector.shape_cast %18 : vector<128xf32> to vector<1x1x128xf32>
    %c0_15 = arith.constant 0 : index
    %c0_16 = arith.constant 0 : index
    %c0_17 = arith.constant 0 : index
    %20 = vector.load %arg8[%c0_15, %c0_16, %c0_17] : memref<1x1x128xf32, #tpu.memory_space<vmem>>, vector<1x1x128xf32>
    tpu.vector_store %arg8[%c0_15, %c0_16, %c0_17], %19 {strides = array<i32>} : memref<1x1x128xf32, #tpu.memory_space<vmem>>, vector<1x1x128xf32>,
    return
  }
  func.func @transform_0(%arg0: i32) -> (i32, i32) {
    %c0_i32 = arith.constant 0 : i32
    %c0_i32_0 = arith.constant 0 : i32
    return %arg0, %c0_i32 : i32, i32
  }
  func.func @transform_1(%arg0: i32) -> (i32, i32) {
    %c0_i32 = arith.constant 0 : i32
    %c0_i32_0 = arith.constant 0 : i32
    return %arg0, %c0_i32 : i32, i32
  }
  func.func @transform_2(%arg0: i32) -> (i32, i32) {
    %c0_i32 = arith.constant 0 : i32
    %c0_i32_0 = arith.constant 0 : i32
    %c0_i32_1 = arith.constant 0 : i32
    return %c0_i32, %c0_i32_0 : i32, i32
  }
  func.func @transform_3(%arg0: i32) -> (i32, i32) {
    %c0_i32 = arith.constant 0 : i32
    %c0_i32_0 = arith.constant 0 : i32
    %c0_i32_1 = arith.constant 0 : i32
    return %c0_i32, %c0_i32_0 : i32, i32
  }
  func.func @transform_4(%arg0: i32) -> (i32, i32) {
    %c0_i32 = arith.constant 0 : i32
    %c0_i32_0 = arith.constant 0 : i32
    %c0_i32_1 = arith.constant 0 : i32
    return %c0_i32, %c0_i32_0 : i32, i32
  }
  func.func @transform_5(%arg0: i32) -> (i32, i32) {
    %c0_i32 = arith.constant 0 : i32
    %c0_i32_0 = arith.constant 0 : i32
    %c0_i32_1 = arith.constant 0 : i32
    return %c0_i32, %c0_i32_0 : i32, i32
  }
  func.func @transform_6(%arg0: i32) -> i32 {
    %c0_i32 = arith.constant 0 : i32
    %c0_i32_0 = arith.constant 0 : i32
    return %c0_i32 : i32
  }
  func.func @transform_7(%arg0: i32) -> (i32, i32, i32) {
    %c0_i32 = arith.constant 0 : i32
    %c0_i32_0 = arith.constant 0 : i32
    %c0_i32_1 = arith.constant 0 : i32
    return %arg0, %c0_i32, %c0_i32_0 : i32, i32, i32
  }
}

</mosaic_0001>

<bundles_post_ra>
// kernel: tpu_custom_call.1
= control target key start
LH: loop header
LB: loop body
LE: loop exit
PB: predicated region body
PF: predicated region fallthrough
CT: control target
= control target key end

     0   :  { %vm68_vm0 = vcmask 261120   ;;  %s876_s0 = inlined_call_operand.vmem [shape: f32[128,32], index: 0, kind: input, shape index: {}]   ;;  %s877_s1 = inlined_call_operand.vmem [shape: f32[128,32], index: 1, kind: input, shape index: {}]   ;;  %s878_s2 = inlined_call_operand.vmem [shape: f32[32,32], index: 2, kind: input, shape index: {}]   ;;  %s879_s3 = inlined_call_operand.vmem [shape: f32[32,32], index: 3, kind: input, shape index: {}]   ;;  %s880_s4 = inlined_call_operand.vmem [shape: f32[1,32], index: 4, kind: input, shape index: {}]   ;;  %s881_s5 = inlined_call_operand.vmem [shape: f32[1,32], index: 5, kind: input, shape index: {}]   ;;  %s882_s6 = inlined_call_operand.<no memory space> [shape: f32[1], index: 6, kind: input, shape index: {}]   ;;  %s883_s7 = inlined_call_operand.hbm [shape: f32[1,1,128], index: 7, kind: output, shape index: {}]  }
   0x1   :  { %v67_v0 = vld [vmem:[%s879_s3 + $0x18] sm:$0xff]  ;;  %v66_v2 = vld [vmem:[%s879_s3 + $0x10] sm:$0xff]  ;;  %v65_v4 = vld [vmem:[%s879_s3 + $0x8] sm:$0xff] }
   0x2   :  { %v47_v1 = vld [vmem:[%s878_s2 + $0x18] sm:$0xff]  ;;  %129 = vmatpush.msra.mxu0 %v67_v0  ;;  %v46_v3 = vld [vmem:[%s878_s2 + $0x10] sm:$0xff]  ;;  %546 = vmatpush.msra.mxu2 %v67_v0  ;;  %v45_v5 = vld [vmem:[%s878_s2 + $0x8] sm:$0xff] }
   0x3   :  { %242 = vmatpush.msra.mxu1 %v47_v1  ;;  %550 = vmatpush.msra.mxu3 %v47_v1  ;;  %v64_v6 = vld [vmem:[%s879_s3] sm:$0xff] }
   0x4   :  { %130 = vmatpush.msra.mxu0 %v66_v2  ;;  %547 = vmatpush.msra.mxu2 %v66_v2  ;;  %v44_v7 = vld [vmem:[%s878_s2] sm:$0xff] }
   0x5   :  { %243 = vmatpush.msra.mxu1 %v46_v3  ;;  %551 = vmatpush.msra.mxu3 %v46_v3  ;;  %v48_v8 = vld [vmem:[%s877_s1] sm:$0xff] }
   0x6   :  { %131 = vmatpush.msra.mxu0 %v65_v4  ;;  %v28_v9 = vld [vmem:[%s876_s0] sm:$0xff]  ;;  %548 = vmatpush.msra.mxu2 %v65_v4 }
   0x7   :  { %244 = vmatpush.msra.mxu1 %v45_v5  ;;  %552 = vmatpush.msra.mxu3 %v45_v5  ;;  %v56_v10 = vld [vmem:[%s877_s1 + $0x40] sm:$0xff] }
   0x8   :  { %132 = vmatpush.msra.mxu0 %v64_v6  ;;  %v36_v11 = vld [vmem:[%s876_s0 + $0x40] sm:$0xff]  ;;  %549 = vmatpush.msra.mxu2 %v64_v6 }
   0x9   :  { %245 = vmatpush.msra.mxu1 %v44_v7  ;;  %514 = vmatmul.msk.f32.vlgmr.msra.gmra.mxu0 %vm68_vm0, %v48_v8 }
   0xa   :  { %530 = vmatmul.msk.f32.vlgmr.msra.gmra.mxu1 %vm68_vm0, %v28_v9  ;;  %553 = vmatpush.msra.mxu3 %v44_v7 }
   0xb   :  { %13 = vsyncpa [#allocation4], 0  ;;  %522 = vmatmul.msk.f32.vlgmr.msra.gmra.mxu2 %vm68_vm0, %v56_v10  ;;  %538 = vmatmul.msk.f32.vlgmr.msra.gmra.mxu3 %vm68_vm0, %v36_v11  ;;  %v49_v12 = vld [vmem:[%s877_s1 + $0x8] sm:$0xff]  ;;  %v50_v16 = vld [vmem:[%s877_s1 + $0x10] sm:$0xff]  ;;  %vm438_vm1 = vcmask 130112   ;;  %vm442_vm2 = vcmask 195712  }
   0xc   :  { %v29_v13 = vld [vmem:[%s876_s0 + $0x8] sm:$0xff]  ;;  %v30_v17 = vld [vmem:[%s876_s0 + $0x10] sm:$0xff]  ;;  %v51_v20 = vld [vmem:[%s877_s1 + $0x18] sm:$0xff]  ;;  %vm446_vm3 = vcmask 261312   ;;  %vm450_vm4 = vcmask 326912   ;;  %vm454_vm5 = vcmask 392512  }
   0xd   :  { %v57_v14 = vld [vmem:[%s877_s1 + $0x48] sm:$0xff]  ;;  %v58_v18 = vld [vmem:[%s877_s1 + $0x50] sm:$0xff]  ;;  %v31_v21 = vld [vmem:[%s876_s0 + $0x18] sm:$0xff]  ;;  %vm458_vm6 = vcmask 458112   ;;  %vm462_vm7 = vcmask 523712   ;;  %vm466_vm8 = vcmask 589312  }
   0xe   :  { %v37_v15 = vld [vmem:[%s876_s0 + $0x48] sm:$0xff]  ;;  %v38_v19 = vld [vmem:[%s876_s0 + $0x50] sm:$0xff]  ;;  %v59_v22 = vld [vmem:[%s877_s1 + $0x58] sm:$0xff]  ;;  %vm470_vm9 = vcmask 654912   ;;  %vm474_vm10 = vcmask 720512   ;;  %vm478_vm11 = vcmask 786112  }
   0xf   :  { %v39_v23 = vld [vmem:[%s876_s0 + $0x58] sm:$0xff]  ;;  %v52_v24 = vld [vmem:[%s877_s1 + $0x20] sm:$0xff]  ;;  %v53_v28 = vld [vmem:[%s877_s1 + $0x28] sm:$0xff]  ;;  %vm482_vm12 = vcmask 851712   ;;  %vm486_vm13 = vcmask 917312   ;;  %vm490_vm14 = vcmask 982912  }
  0x10   :  { %v32_v25 = vld [vmem:[%s876_s0 + $0x20] sm:$0xff]  ;;  %v33_v29 = vld [vmem:[%s876_s0 + $0x28] sm:$0xff]  ;;  %v54_v32 = vld [vmem:[%s877_s1 + $0x30] sm:$0xff]  ;;  %s505_s11 = sshll.u32 %s883_s7, 4  ;;  %vm494_vm15 = vcmask 1048512   ;;  %s506_s11 = int_to_ptr.hbm [resolvable:$true] %s505_s11 }
  0x11   :  { %515 = vmatmul.msk.f32.gmra.mxu0 %vm68_vm0, %v49_v12  ;;  %v60_v26 = vld [vmem:[%s877_s1 + $0x60] sm:$0xff]  ;;  %v61_v30 = vld [vmem:[%s877_s1 + $0x68] sm:$0xff]  ;;  %v34_v33 = vld [vmem:[%s876_s0 + $0x30] sm:$0xff] }
  0x12   :  { %531 = vmatmul.msk.f32.gmra.mxu1 %vm68_vm0, %v29_v13  ;;  %v40_v27 = vld [vmem:[%s876_s0 + $0x60] sm:$0xff]  ;;  %v41_v31 = vld [vmem:[%s876_s0 + $0x68] sm:$0xff]  ;;  %v62_v34 = vld [vmem:[%s877_s1 + $0x70] sm:$0xff] }
  0x13   :  { %523 = vmatmul.msk.f32.gmra.mxu2 %vm68_vm0, %v57_v14  ;;  %539 = vmatmul.msk.f32.gmra.mxu3 %vm68_vm0, %v37_v15  ;;  %v42_v35 = vld [vmem:[%s876_s0 + $0x70] sm:$0xff]  ;;  %v55_v36 = vld [vmem:[%s877_s1 + $0x38] sm:$0xff]  ;;  %v779_v40 = vld [vmem:[%s880_s4] ss:$0 sm:$0xff] }
  0x14   :  { %v35_v37 = vld [vmem:[%s876_s0 + $0x38] sm:$0xff]  ;;  %v785_v45 = vld [vmem:[%s881_s5] ss:$0 sm:$0xff] }
  0x15   :  { %v63_v38 = vld [vmem:[%s877_s1 + $0x78] sm:$0xff] }
  0x16   :  { %v43_v39 = vld [vmem:[%s876_s0 + $0x78] sm:$0xff] }
  0x19   :  { %516 = vmatmul.msk.f32.gmra.mxu0 %vm68_vm0, %v50_v16 }
  0x1a   :  { %532 = vmatmul.msk.f32.gmra.mxu1 %vm68_vm0, %v30_v17 }
  0x1b   :  { %524 = vmatmul.msk.f32.gmra.mxu2 %vm68_vm0, %v58_v18  ;;  %540 = vmatmul.msk.f32.gmra.mxu3 %vm68_vm0, %v38_v19 }
  0x21   :  { %517 = vmatmul.msk.f32.gmra.mxu0 %vm68_vm0, %v51_v20 }
  0x22   :  { %533 = vmatmul.msk.f32.gmra.mxu1 %vm68_vm0, %v31_v21 }
  0x23   :  { %525 = vmatmul.msk.f32.gmra.mxu2 %vm68_vm0, %v59_v22  ;;  %541 = vmatmul.msk.f32.gmra.mxu3 %vm68_vm0, %v39_v23 }
  0x29   :  { %518 = vmatmul.msk.f32.gmra.mxu0 %vm68_vm0, %v52_v24 }
  0x2a   :  { %534 = vmatmul.msk.f32.gmra.mxu1 %vm68_vm0, %v32_v25 }
  0x2b   :  { %526 = vmatmul.msk.f32.gmra.mxu2 %vm68_vm0, %v60_v26  ;;  %542 = vmatmul.msk.f32.gmra.mxu3 %vm68_vm0, %v40_v27 }
  0x31   :  { %519 = vmatmul.msk.f32.gmra.mxu0 %vm68_vm0, %v53_v28 }
  0x32   :  { %535 = vmatmul.msk.f32.gmra.mxu1 %vm68_vm0, %v33_v29 }
  0x33   :  { %527 = vmatmul.msk.f32.gmra.mxu2 %vm68_vm0, %v61_v30  ;;  %543 = vmatmul.msk.f32.gmra.mxu3 %vm68_vm0, %v41_v31 }
  0x39   :  { %520 = vmatmul.msk.f32.gmra.mxu0 %vm68_vm0, %v54_v32 }
  0x3a   :  { %536 = vmatmul.msk.f32.gmra.mxu1 %vm68_vm0, %v34_v33 }
  0x3b   :  { %528 = vmatmul.msk.f32.gmra.mxu2 %vm68_vm0, %v62_v34  ;;  %544 = vmatmul.msk.f32.gmra.mxu3 %vm68_vm0, %v42_v35 }
  0x41   :  { %521 = vmatmul.msk.f32.gmra.mxu0 %vm68_vm0, %v55_v36 }
  0x42   :  { %537 = vmatmul.msk.f32.gmra.mxu1 %vm68_vm0, %v35_v37 }
  0x43   :  { %529 = vmatmul.msk.f32.gmra.mxu2 %vm68_vm0, %v63_v38  ;;  %545 = vmatmul.msk.f32.gmra.mxu3 %vm68_vm0, %v43_v39 }
  0x86   :  { %v134_v41 = vpop.f32.mrf.mxu0 }
  0x87   :  { %v247_v42 = vpop.f32.mrf.mxu1 }
  0x88   :  { %v248_v43 = vadd.f32 %v247_v42, %v134_v41 }
  0x8a   :  { %v299_v44 = vadd.f32 %v779_v40, %v248_v43 }
  0x8c   :  { %v315_v46 = vmax.f32 %v299_v44, 0.0 }
  0x8e   :  { %v335_v47 = vmul.f32 %v785_v45, %v315_v46  ;;  %v137_v48 = vpop.f32.mrf.mxu0  ;;  %v158_v49 = vpop.f32.mrf.mxu2 }
  0x8f   :  { %v250_v50 = vpop.f32.mrf.mxu1  ;;  %v271_v51 = vpop.f32.mrf.mxu3 }
  0x90   :  { %v351_v52 = vsel %vm68_vm0, %v335_v47, 0.0  ;;  %v251_v53 = vadd.f32 %v250_v50, %v137_v48  ;;  %v272_v54 = vadd.f32 %v271_v51, %v158_v49 }
  0x91   :  { %352 = vadd.xlane.f32.xlu0 %v351_v52 }
  0x92   :  { %v300_v55 = vadd.f32 %v779_v40, %v251_v53  ;;  %v307_v56 = vadd.f32 %v779_v40, %v272_v54 }
  0x94   :  { %v316_v57 = vmax.f32 %v300_v55, 0.0  ;;  %v323_v58 = vmax.f32 %v307_v56, 0.0 }
  0x96   :  { %v140_v59 = vpop.f32.mrf.mxu0  ;;  %v161_v60 = vpop.f32.mrf.mxu2  ;;  %v336_v61 = vmul.f32 %v785_v45, %v316_v57  ;;  %v343_v62 = vmul.f32 %v785_v45, %v323_v58 }
  0x97   :  { %v253_v63 = vpop.f32.mrf.mxu1  ;;  %v274_v0 = vpop.f32.mrf.mxu3 }
  0x98   :  { %v254_v1 = vadd.f32 %v253_v63, %v140_v59  ;;  %v275_v2 = vadd.f32 %v274_v0, %v161_v60  ;;  %v354_v3 = vsel %vm68_vm0, %v336_v61, 0.0  ;;  %v375_v4 = vsel %vm68_vm0, %v343_v62, 0.0 }
  0x99   :  { %355 = vadd.xlane.f32.xlu0 %v354_v3  ;;  %376 = vadd.xlane.f32.xlu2 %v375_v4 }
  0x9a   :  { %v301_v5 = vadd.f32 %v779_v40, %v254_v1  ;;  %v308_v6 = vadd.f32 %v779_v40, %v275_v2 }
  0x9c   :  { %v317_v7 = vmax.f32 %v301_v5, 0.0  ;;  %v324_v8 = vmax.f32 %v308_v6, 0.0 }
  0x9e   :  { %v143_v9 = vpop.f32.mrf.mxu0  ;;  %v164_v10 = vpop.f32.mrf.mxu2  ;;  %v337_v11 = vmul.f32 %v785_v45, %v317_v7  ;;  %v344_v12 = vmul.f32 %v785_v45, %v324_v8 }
  0x9f   :  { %v256_v13 = vpop.f32.mrf.mxu1  ;;  %v277_v14 = vpop.f32.mrf.mxu3 }
  0xa0   :  { %v257_v15 = vadd.f32 %v256_v13, %v143_v9  ;;  %v278_v16 = vadd.f32 %v277_v14, %v164_v10  ;;  %v357_v17 = vsel %vm68_vm0, %v337_v11, 0.0  ;;  %v378_v18 = vsel %vm68_vm0, %v344_v12, 0.0 }
  0xa1   :  { %358 = vadd.xlane.f32.xlu1 %v357_v17  ;;  %379 = vadd.xlane.f32.xlu0 %v378_v18 }
  0xa2   :  { %v309_v19 = vadd.f32 %v779_v40, %v278_v16  ;;  %v302_v20 = vadd.f32 %v779_v40, %v257_v15 }
  0xa4   :  { %v325_v21 = vmax.f32 %v309_v19, 0.0  ;;  %v318_v27 = vmax.f32 %v302_v20, 0.0 }
  0xa6   :  { %v146_v22 = vpop.f32.mrf.mxu0  ;;  %v167_v23 = vpop.f32.mrf.mxu2  ;;  %v345_v24 = vmul.f32 %v785_v45, %v325_v21  ;;  %v338_v32 = vmul.f32 %v785_v45, %v318_v27 }
  0xa7   :  { %v259_v25 = vpop.f32.mrf.mxu1  ;;  %v280_v26 = vpop.f32.mrf.mxu3 }
  0xa8   :  { %v260_v28 = vadd.f32 %v259_v25, %v146_v22  ;;  %v381_v29 = vsel %vm68_vm0, %v345_v24, 0.0  ;;  %v281_v36 = vadd.f32 %v280_v26, %v167_v23  ;;  %v360_v42 = vsel %vm68_vm0, %v338_v32, 0.0 }
  0xa9   :  { %382 = vadd.xlane.f32.xlu1 %v381_v29 }
  0xaa   :  { %v303_v30 = vadd.f32 %v779_v40, %v260_v28  ;;  %v310_v44 = vadd.f32 %v779_v40, %v281_v36 }
  0xac   :  { %v319_v31 = vmax.f32 %v303_v30, 0.0  ;;  %v326_v50 = vmax.f32 %v310_v44, 0.0 }
  0xae   :  { %v149_v33 = vpop.f32.mrf.mxu0  ;;  %v170_v34 = vpop.f32.mrf.mxu2  ;;  %v339_v35 = vmul.f32 %v785_v45, %v319_v31  ;;  %v346_v58 = vmul.f32 %v785_v45, %v326_v50 }
  0xaf   :  { %v262_v37 = vpop.f32.mrf.mxu1  ;;  %v283_v38 = vpop.f32.mrf.mxu3 }
  0xb0   :  { %v263_v39 = vadd.f32 %v262_v37, %v149_v33  ;;  %v363_v41 = vsel %vm68_vm0, %v339_v35, 0.0  ;;  %v284_v51 = vadd.f32 %v283_v38, %v170_v34  ;;  %v384_v2 = vsel %vm68_vm0, %v346_v58, 0.0 }
  0xb1   :  { %364 = vadd.xlane.f32.xlu2 %v363_v41  ;;  %361 = vadd.xlane.f32.xlu1 %v360_v42  ;;  %v433_v34 = vlaneseq }
  0xb2   :  { %v304_v43 = vadd.f32 %v779_v40, %v263_v39  ;;  %v311_v57 = vadd.f32 %v779_v40, %v284_v51 }
  0xb3   :  { %v834_v35 = vand.u32 127, %v433_v34 }
  0xb4   :  { %v320_v46 = vmax.f32 %v304_v43, 0.0  ;;  %v327_v63 = vmax.f32 %v311_v57, 0.0 }
  0xb5   :  { %v436_v38 = vadd.s32 4294967288, %v834_v35  ;;  %v440_v41 = vadd.s32 4294967280, %v834_v35  ;;  %v444_v44 = vadd.s32 4294967272, %v834_v35  ;;  %v448_v50 = vadd.s32 4294967264, %v834_v35 }
  0xb6   :  { %v152_v47 = vpop.f32.mrf.mxu0  ;;  %v173_v48 = vpop.f32.mrf.mxu2  ;;  %v340_v49 = vmul.f32 %v785_v45, %v320_v46  ;;  %v347_v9 = vmul.f32 %v785_v45, %v327_v63 }
  0xb7   :  { %v265_v52 = vpop.f32.mrf.mxu1  ;;  %v286_v53 = vpop.f32.mrf.mxu3 }
  0xb8   :  { %v266_v54 = vadd.f32 %v265_v52, %v152_v47  ;;  %v366_v55 = vsel %vm68_vm0, %v340_v49, 0.0  ;;  %v287_v3 = vadd.f32 %v286_v53, %v173_v48  ;;  %v387_v17 = vsel %vm68_vm0, %v347_v9, 0.0 }
  0xb9   :  { %367 = vadd.xlane.f32.xlu2 %v366_v55 }
  0xba   :  { %v305_v56 = vadd.f32 %v779_v40, %v266_v54  ;;  %v312_v10 = vadd.f32 %v779_v40, %v287_v3  ;;  %v452_v54 = vadd.s32 4294967256, %v834_v35  ;;  %v468_v3 = vadd.s32 4294967224, %v834_v35 }
  0xbc   :  { %v321_v59 = vmax.f32 %v305_v56, 0.0  ;;  %v328_v18 = vmax.f32 %v312_v10, 0.0  ;;  %v456_v56 = vadd.s32 4294967248, %v834_v35 }
  0xbe   :  { %v155_v60 = vpop.f32.mrf.mxu0  ;;  %v176_v61 = vpop.f32.mrf.mxu2  ;;  %v341_v62 = vmul.f32 %v785_v45, %v321_v59  ;;  %v348_v24 = vmul.f32 %v785_v45, %v328_v18 }
  0xbf   :  { %v268_v0 = vpop.f32.mrf.mxu1  ;;  %v289_v1 = vpop.f32.mrf.mxu3 }
  0xc0   :  { %v269_v4 = vadd.f32 %v268_v0, %v155_v60  ;;  %v290_v5 = vadd.f32 %v289_v1, %v176_v61  ;;  %v369_v6 = vsel %vm68_vm0, %v341_v62, 0.0  ;;  %v390_v26 = vsel %vm68_vm0, %v348_v24, 0.0 }
  0xc1   :  { %385 = vadd.xlane.f32.xlu2 %v384_v2  ;;  %370 = vadd.xlane.f32.xlu0 %v369_v6  ;;  %v464_v60 = vadd.s32 4294967232, %v834_v35  ;;  %v460_v1 = vadd.s32 4294967240, %v834_v35 }
  0xc2   :  { %v306_v7 = vadd.f32 %v779_v40, %v269_v4  ;;  %v313_v8 = vadd.f32 %v779_v40, %v290_v5 }
  0xc4   :  { %v322_v11 = vmax.f32 %v306_v7, 0.0  ;;  %v329_v12 = vmax.f32 %v313_v8, 0.0  ;;  %v472_v8 = vadd.s32 4294967216, %v834_v35 }
  0xc6   :  { %v179_v13 = vpop.f32.mrf.mxu2  ;;  %v342_v14 = vmul.f32 %v785_v45, %v322_v11  ;;  %v349_v15 = vmul.f32 %v785_v45, %v329_v12  ;;  %v476_v12 = vadd.s32 4294967208, %v834_v35 }
  0xc7   :  { %v292_v16 = vpop.f32.mrf.mxu3 }
  0xc8   :  { %v293_v19 = vadd.f32 %v292_v16, %v179_v13  ;;  %v372_v20 = vsel %vm68_vm0, %v342_v14, 0.0  ;;  %v393_v21 = vsel %vm68_vm0, %v349_v15, 0.0 }
  0xc9   :  { %373 = vadd.xlane.f32.xlu1 %v372_v20  ;;  %388 = vadd.xlane.f32.xlu0 %v387_v17  ;;  %v480_v20 = vadd.s32 4294967200, %v834_v35 }
  0xca   :  { %v314_v22 = vadd.f32 %v779_v40, %v293_v19  ;;  %394 = vadd.xlane.f32.xlu2 %v393_v21 }
  0xcc   :  { %v330_v23 = vmax.f32 %v314_v22, 0.0 }
  0xce   :  { %v350_v25 = vmul.f32 %v785_v45, %v330_v23  ;;  %v839_v45 = vstv %s882_s6  ;;  %s583_s6 = smov [#allocation3]  }
  0xcf   :  { %s503_s8 = sshll.u32 %s583_s6, 4  ;;  %s504_s8 = int_to_ptr.vmem [resolvable:$true] %s503_s8 }
  0xd0   :  { %v396_v27 = vsel %vm68_vm0, %v350_v25, 0.0 }
  0xd1   :  { %391 = vadd.xlane.f32.xlu1 %v390_v26  ;;  %397 = vadd.xlane.f32.xlu0 %v396_v27  ;;  %v484_v27 = vadd.s32 4294967192, %v834_v35 }
 0x104   :  { %v353_v28 = vpop.xlane.xlu0 %352 }
 0x105   :  { %v401_v43 = vadd.f32 %v839_v45, %v353_v28  ;;  %v492_v28 = vadd.s32 4294967176, %v834_v35 }
 0x107   :  { %v435_v52 = vperm.slane %v401_v43, %v834_v35 }
 0x10c   :  { %v377_v30 = vpop.xlane.xlu2 %376  ;;  %v356_v31 = vpop.xlane.xlu0 %355 }
 0x10d   :  { %v402_v39 = vadd.f32 %v839_v45, %v356_v31  ;;  %v409_v2 = vadd.f32 %v839_v45, %v377_v30  ;;  %v488_v30 = vadd.s32 4294967184, %v834_v35 }
 0x10f   :  { %v437_v48 = vperm.slane %v402_v39, %v436_v38  ;;  %v465_v16 = vperm.slane %v409_v2, %v464_v60 }
 0x111   :  { %v439_v58 = vsel %vm438_vm1, %v437_v48, %v435_v52 }
 0x114   :  { %v359_v29 = vpop.xlane.xlu1 %358  ;;  %v380_v40 = vpop.xlane.xlu0 %379 }
 0x115   :  { %v403_v42 = vadd.f32 %v839_v45, %v359_v29  ;;  %v410_v7 = vadd.f32 %v839_v45, %v380_v40 }
 0x117   :  { %v441_v49 = vperm.slane %v403_v42, %v440_v41  ;;  %v469_v18 = vperm.slane %v410_v7, %v468_v3 }
 0x119   :  { %v443_v61 = vsel %vm442_vm2, %v441_v49, %v439_v58 }
 0x11c   :  { %v383_v33 = vpop.xlane.xlu1 %382 }
 0x11d   :  { %v411_v10 = vadd.f32 %v839_v45, %v383_v33 }
 0x11f   :  { %v473_v22 = vperm.slane %v411_v10, %v472_v8 }
 0x124   :  { %v365_v32 = vpop.xlane.xlu2 %364  ;;  %v362_v37 = vpop.xlane.xlu1 %361 }
 0x125   :  { %v404_v46 = vadd.f32 %v839_v45, %v362_v37  ;;  %v405_v51 = vadd.f32 %v839_v45, %v365_v32 }
 0x127   :  { %v445_v53 = vperm.slane %v404_v46, %v444_v44  ;;  %v449_v62 = vperm.slane %v405_v51, %v448_v50 }
 0x129   :  { %v447_v63 = vsel %vm446_vm3, %v445_v53, %v443_v61 }
 0x12a   :  { %v451_v11 = vsel %vm450_vm4, %v449_v62, %v447_v63 }
 0x12c   :  { %v368_v36 = vpop.xlane.xlu2 %367 }
 0x12d   :  { %v406_v55 = vadd.f32 %v839_v45, %v368_v36 }
 0x12f   :  { %v453_v0 = vperm.slane %v406_v55, %v452_v54 }
 0x131   :  { %v455_v13 = vsel %vm454_vm5, %v453_v0, %v451_v11 }
 0x134   :  { %v371_v47 = vpop.xlane.xlu0 %370  ;;  %v386_v59 = vpop.xlane.xlu2 %385 }
 0x135   :  { %v407_v57 = vadd.f32 %v839_v45, %v371_v47  ;;  %v412_v14 = vadd.f32 %v839_v45, %v386_v59 }
 0x137   :  { %v457_v4 = vperm.slane %v407_v57, %v456_v56  ;;  %v477_v25 = vperm.slane %v412_v14, %v476_v12 }
 0x139   :  { %v459_v17 = vsel %vm458_vm6, %v457_v4, %v455_v13 }
 0x13c   :  { %v374_v5 = vpop.xlane.xlu1 %373  ;;  %v389_v6 = vpop.xlane.xlu0 %388 }
 0x13d   :  { %v408_v9 = vadd.f32 %v839_v45, %v374_v5  ;;  %v395_v21 = vpop.xlane.xlu2 %394  ;;  %v413_v24 = vadd.f32 %v839_v45, %v389_v6 }
 0x13e   :  { %v415_v31 = vadd.f32 %v839_v45, %v395_v21 }
 0x13f   :  { %v461_v15 = vperm.slane %v408_v9, %v460_v1  ;;  %v481_v37 = vperm.slane %v413_v24, %v480_v20 }
 0x140   :  { %v489_v41 = vperm.slane %v415_v31, %v488_v30 }
 0x141   :  { %v463_v19 = vsel %vm462_vm7, %v461_v15, %v459_v17 }
 0x142   :  { %v467_v23 = vsel %vm466_vm8, %v465_v16, %v463_v19 }
 0x143   :  { %v471_v26 = vsel %vm470_vm9, %v469_v18, %v467_v23 }
 0x144   :  { %v475_v29 = vsel %vm474_vm10, %v473_v22, %v471_v26  ;;  %v392_v32 = vpop.xlane.xlu1 %391  ;;  %v398_v33 = vpop.xlane.xlu0 %397 }
 0x145   :  { %v479_v34 = vsel %vm478_vm11, %v477_v25, %v475_v29  ;;  %v414_v40 = vadd.f32 %v839_v45, %v392_v32  ;;  %v416_v36 = vadd.f32 %v839_v45, %v398_v33 }
 0x146   :  { %v483_v35 = vsel %vm482_vm12, %v481_v37, %v479_v34 }
 0x147   :  { %v485_v38 = vperm.slane %v414_v40, %v484_v27  ;;  %v493_v39 = vperm.slane %v416_v36, %v492_v28 }
 0x149   :  { %v487_v42 = vsel %vm486_vm13, %v485_v38, %v483_v35 }
 0x14a   :  { %v491_v43 = vsel %vm490_vm14, %v489_v41, %v487_v42 }
 0x14b   :  { %v495_v44 = vsel %vm494_vm15, %v493_v39, %v491_v43 }
 0x14c   :  { %497 = vst [vmem:[#allocation3] sm:$0x1] %v495_v44 }
 0x14d   :  { %508 = dma.vmem_to_hbm [thread:$0]  %s504_s8, 16, %s506_s11, [#allocation4]  }
 0x14e   :  { %581 = dma.done.wait [#allocation4], 16  }
 0x14f   :  { %582 = vsyncadd [#allocation4], 4294967280 }
 0x150   :  { %513 = vsyncpa [#allocation4], 1 }

</bundles_post_ra>
